<compile_context>
chip_gen: v5e
topology: v5e:2x2
jax: 0.10.0
libtpu: 0.0.40
codegen_flags: <defaults>
</compile_context>

<pallas_src>
import functools

import jax
import jax.numpy as jnp
from jax.experimental import pallas as pl
from jax.experimental.pallas import tpu as pltpu


def _nbytes(shape, dtype):
    n = 1
    for d in shape:
        n *= int(d)
    return n * jnp.dtype(dtype).itemsize


def _stack_lstm_kernel(x0_ref, h_ref, c_ref, w_ih_ref, w_hh_ref, b_ref,
                       out_ref, h_out_ref, c_out_ref, act_ref,
                       *, residual, residual_layer0):
    """One grid step = one LSTM layer for one batch tile (grid=(nb, L))."""
    H = h_out_ref.shape[-1]
    d_max = act_ref.shape[-1]
    layer = pl.program_id(1)
    n_layers = pl.num_programs(1)

    # Layer 0: (re)load this batch tile's padded input into the carry.
    @pl.when(layer == 0)
    def _():
        act_ref[...] = x0_ref[...].astype(act_ref.dtype)

    act = act_ref[...]                                # (tb, d_max) f32 carry
    c = c_ref[0].astype(jnp.float32)                  # (tb, H)

    # Two accumulating MXU matmuls (no activation concat, no wasted zero K).
    gates = jnp.dot(act, w_ih_ref[0], preferred_element_type=jnp.float32)
    gates = gates + jnp.dot(h_ref[0], w_hh_ref[0],
                            preferred_element_type=jnp.float32)
    gates = gates + b_ref[0].astype(jnp.float32)      # (1, 4H) broadcast

    # Full-width nonlinearity: one tanh over (tb, 4H), then a full-width
    # affine turns the i/f/o columns into sigmoids:
    #   sigmoid(x) = 0.5 + 0.5 * tanh(x / 2),  g column stays tanh.
    col = jax.lax.broadcasted_iota(jnp.int32, gates.shape, 1)
    is_g = (col >= 2 * H) & (col < 3 * H)
    alpha = jnp.where(is_g, 1.0, 0.5)
    beta = jnp.where(is_g, 0.0, 0.5)
    acts = alpha * jnp.tanh(alpha * gates) + beta     # [sig i, sig f, tanh g, sig o]

    i_g = acts[:, 0 * H:1 * H]
    f_g = acts[:, 1 * H:2 * H]
    g_g = acts[:, 2 * H:3 * H]
    o_g = acts[:, 3 * H:4 * H]

    c_new = f_g * c + i_g * g_g
    h_new = o_g * jnp.tanh(c_new)

    h_out_ref[0] = h_new.astype(h_out_ref.dtype)
    c_out_ref[0] = c_new.astype(c_out_ref.dtype)

    # Residual: PyTorch adds the layer input when widths match.
    out = h_new
    if residual:
        res = act[:, :H]
        if residual_layer0:
            out = out + res                            # every layer
        else:
            # layer 0 has mismatched width -> only layers > 0 get residual.
            gate = (layer > 0).astype(out.dtype)
            out = out + gate * res

    # TODO(synk): dropout with p > 0 (training mode) not implemented; the
    # module default p=0 is the identity, which is what this kernel computes.

    out_ref[...] = out.astype(out_ref.dtype)           # last layer's write wins

    @pl.when(layer + 1 < n_layers)
    def _():
        if d_max == H:
            act_ref[...] = out.astype(act_ref.dtype)
        else:
            act_ref[:, :H] = out.astype(act_ref.dtype)


def stack_lstm_cell_forward(inputs, hidden, params, *, residual=True,
                            batch_tile=None):
    """Forward pass of StackLSTMCell.

    inputs: (B, input_size); hidden: tuple of (n_layers, B, H) arrays.
    params: {"w_ih": (L, D_max, 4H), "w_hh": (L, H, 4H), "b": (L, 1, 4H)}
            (pre-transposed, layer-0 rows zero-padded up to D_max).
    Returns (outputs, (next_h, next_c)).
    """
    h_state, c_state = hidden
    n_layers, B, H = h_state.shape
    w_ih = params["w_ih"]
    w_hh = params["w_hh"]
    b = params["b"]
    d_max = w_ih.shape[1]
    input_size = inputs.shape[-1]

    # Pad the layer-0 input up to the packed width (no-op when sizes match).
    x = inputs
    if input_size < d_max:
        x = jnp.pad(x, ((0, 0), (0, d_max - input_size)))

    residual_layer0 = residual and (input_size == H)

    # Batch-tile "parallel" axis (v7x megacore). Sub-batch tiles require
    # (8, 128)-aligned blocks; otherwise fall back to a single tile.
    if batch_tile is None:
        batch_tile = B
    if (B % batch_tile != 0) or (
            batch_tile != B and (batch_tile % 8 or H % 128 or d_max % 128)):
        batch_tile = B
    tb = batch_tile
    nb = B // tb

    kernel = functools.partial(_stack_lstm_kernel,
                               residual=residual,
                               residual_layer0=residual_layer0)

    in_specs = [
        pl.BlockSpec((tb, d_max), lambda bi, l: (bi, 0)),            # x0
        pl.BlockSpec((1, tb, H), lambda bi, l: (l, bi, 0)),          # h
        pl.BlockSpec((1, tb, H), lambda bi, l: (l, bi, 0)),          # c
        pl.BlockSpec((1, d_max, 4 * H), lambda bi, l: (l, 0, 0)),    # w_ih
        pl.BlockSpec((1, H, 4 * H), lambda bi, l: (l, 0, 0)),        # w_hh
        pl.BlockSpec((1, 1, 4 * H), lambda bi, l: (l, 0, 0)),        # bias
    ]
    out_specs = (
        pl.BlockSpec((tb, H), lambda bi, l: (bi, 0)),                # out
        pl.BlockSpec((1, tb, H), lambda bi, l: (l, bi, 0)),          # next_h
        pl.BlockSpec((1, tb, H), lambda bi, l: (l, bi, 0)),          # next_c
    )

    # VMEM budget: double-buffered per-block footprint + scratch + slack.
    block_bytes = (
        _nbytes((tb, d_max), x.dtype)
        + 2 * _nbytes((1, tb, H), h_state.dtype)
        + _nbytes((1, d_max, 4 * H), w_ih.dtype)
        + _nbytes((1, H, 4 * H), w_hh.dtype)
        + _nbytes((1, 1, 4 * H), b.dtype)
        + _nbytes((tb, H), inputs.dtype)
        + _nbytes((1, tb, H), h_state.dtype)
        + _nbytes((1, tb, H), c_state.dtype))
    vmem_limit = 2 * block_bytes + _nbytes((tb, d_max), jnp.float32) + (2 << 20)
    vmem_limit = int(min(max(vmem_limit, 32 << 20), 100 << 20))

    out, next_h, next_c = pl.pallas_call(
        kernel,
        out_shape=(jax.ShapeDtypeStruct((B, H), inputs.dtype),
                   jax.ShapeDtypeStruct((n_layers, B, H), h_state.dtype),
                   jax.ShapeDtypeStruct((n_layers, B, H), c_state.dtype)),
        grid_spec=pltpu.PrefetchScalarGridSpec(
            num_scalar_prefetch=0,
            grid=(nb, n_layers),
            in_specs=in_specs,
            out_specs=out_specs,
            scratch_shapes=[pltpu.VMEM((tb, d_max), jnp.float32)]),
        compiler_params=pltpu.CompilerParams(
            dimension_semantics=("parallel", "arbitrary"),
            vmem_limit_bytes=vmem_limit),
        # next_h aliases h, next_c aliases c -> free state writeback in a loop.
        input_output_aliases={1: 1, 2: 2},
    )(x, h_state, c_state, w_ih, w_hh, b)

    return out, (next_h, next_c)


def init_stack_lstm_params(key, input_size, hidden_size, n_layers,
                           dtype=jnp.float32):
    """nn.LSTMCell-style uniform(-k, k) init, k = 1/sqrt(H).

    Packed for the kernel: per-layer pre-transposed W_ih^T (zero-padded rows
    where the layer input is narrower than D_max), pre-transposed W_hh^T, and
    the two biases folded into one (1, 4H) row.  bf16 weights are supported
    (pass dtype=jnp.bfloat16) -- the kernel keeps gate math in f32.
    """
    H = hidden_size
    d_max = max(input_size, hidden_size)
    k = 1.0 / float(hidden_size) ** 0.5

    w_ih_all = jnp.zeros((n_layers, d_max, 4 * H), dtype)
    w_hh_all = jnp.zeros((n_layers, H, 4 * H), dtype)
    b_all = jnp.zeros((n_layers, 1, 4 * H), dtype)

    d_in = input_size
    for layer in range(n_layers):
        key, k1, k2, k3, k4 = jax.random.split(key, 5)
        w_ih = jax.random.uniform(k1, (4 * H, d_in), dtype, -k, k)
        w_hh = jax.random.uniform(k2, (4 * H, H), dtype, -k, k)
        b_ih = jax.random.uniform(k3, (4 * H,), dtype, -k, k)
        b_hh = jax.random.uniform(k4, (4 * H,), dtype, -k, k)
        w_ih_all = w_ih_all.at[layer, :d_in, :].set(w_ih.T)
        w_hh_all = w_hh_all.at[layer].set(w_hh.T)
        b_all = b_all.at[layer, 0, :].set(b_ih + b_hh)
        d_in = H
    return {"w_ih": w_ih_all, "w_hh": w_hh_all, "b": b_all}


def _reference_forward(inputs, hidden, params, *, residual=True):
    """Pure-JAX reference with standard sigmoid/tanh gates (same semantics)."""
    h_state, c_state = hidden
    n_layers, _, H = h_state.shape
    w_ih, w_hh, b = params["w_ih"], params["w_hh"], params["b"]

    x = inputs
    d_in = inputs.shape[-1]
    next_h, next_c = [], []
    for i in range(n_layers):
        gates = x @ w_ih[i, :d_in, :] + h_state[i] @ w_hh[i] + b[i]
        i_g = jax.nn.sigmoid(gates[:, 0 * H:1 * H])
        f_g = jax.nn.sigmoid(gates[:, 1 * H:2 * H])
        g_g = jnp.tanh(gates[:, 2 * H:3 * H])
        o_g = jax.nn.sigmoid(gates[:, 3 * H:4 * H])
        new_c = f_g * c_state[i] + i_g * g_g
        new_h = o_g * jnp.tanh(new_c)
        x = new_h + x if (residual and x.shape[-1] == new_h.shape[-1]) else new_h
        next_h.append(new_h)
        next_c.append(new_c)
        d_in = H
    return x, (jnp.stack(next_h, axis=0), jnp.stack(next_c, axis=0))


def _run_case(key, B, input_size, hidden_size, n_layers, residual=True):
    key, kx, kh, kc, kp = jax.random.split(key, 5)
    inputs = jax.random.normal(kx, (B, input_size), jnp.float32)
    h0 = jax.random.normal(kh, (n_layers, B, hidden_size), jnp.float32)
    c0 = jax.random.normal(kc, (n_layers, B, hidden_size), jnp.float32)
    params = init_stack_lstm_params(kp, input_size, hidden_size, n_layers)

    ref_out, (ref_h, ref_c) = _reference_forward(
        inputs, (h0, c0), params, residual=residual)

    fwd = jax.jit(functools.partial(stack_lstm_cell_forward, residual=residual))
    out, (next_h, next_c) = fwd(inputs, (h0, c0), params)
    jax.block_until_ready((out, next_h, next_c))

    assert out.shape == (B, hidden_size)
    assert next_h.shape == (n_layers, B, hidden_size)
    assert next_c.shape == (n_layers, B, hidden_size)
    assert jnp.allclose(out, ref_out, atol=2e-5, rtol=2e-5)
    assert jnp.allclose(next_h, ref_h, atol=2e-5, rtol=2e-5)
    assert jnp.allclose(next_c, ref_c, atol=2e-5, rtol=2e-5)


if __name__ == "__main__":
    key = jax.random.PRNGKey(0)
    key, k1, k2 = jax.random.split(key, 3)

    # Case 1: input_size == hidden_size (residual on every layer).
    _run_case(k1, B=8, input_size=32, hidden_size=32, n_layers=3, residual=True)

    # Case 2: input_size != hidden_size (no residual on layer 0, d_max > H).
    _run_case(k2, B=8, input_size=64, hidden_size=32, n_layers=2, residual=True)

    print("KERNEL_OK")
</pallas_src>

<mosaic_0001>
module attributes {stable_mosaic.version = 11 : i64} {
  func.func @_stack_lstm_kernel(%arg0: i32, %arg1: i32, %arg2: memref<8x32xf32, #tpu.memory_space<vmem>>, %arg3: memref<1x8x32xf32, #tpu.memory_space<vmem>>, %arg4: memref<1x8x32xf32, #tpu.memory_space<vmem>>, %arg5: memref<1x32x128xf32, #tpu.memory_space<vmem>>, %arg6: memref<1x32x128xf32, #tpu.memory_space<vmem>>, %arg7: memref<1x1x128xf32, #tpu.memory_space<vmem>>, %arg8: memref<8x32xf32, #tpu.memory_space<vmem>>, %arg9: memref<1x8x32xf32, #tpu.memory_space<vmem>>, %arg10: memref<1x8x32xf32, #tpu.memory_space<vmem>>, %arg11: memref<8x32xf32, #tpu.memory_space<vmem>>) attributes {dimension_semantics = [#tpu.dimension_semantics<parallel>, #tpu.dimension_semantics<arbitrary>], iteration_bounds = array<i64: 1, 3>, scalar_prefetch = 0 : i64, scratch_operands = 1 : i64, tpu.core_type = #tpu.core_type<tc>, window_params = [{transform_indices = @transform_0, window_bounds = array<i64: 8, 32>}, {transform_indices = @transform_1, window_bounds = array<i64: 1, 8, 32>}, {transform_indices = @transform_2, window_bounds = array<i64: 1, 8, 32>}, {transform_indices = @transform_3, window_bounds = array<i64: 1, 32, 128>}, {transform_indices = @transform_4, window_bounds = array<i64: 1, 32, 128>}, {transform_indices = @transform_5, window_bounds = array<i64: 1, 1, 128>}, {transform_indices = @transform_6, window_bounds = array<i64: 8, 32>}, {transform_indices = @transform_7, window_bounds = array<i64: 1, 8, 32>}, {transform_indices = @transform_8, window_bounds = array<i64: 1, 8, 32>}]} {
    %c0_i32 = arith.constant 0 : i32
    %0 = arith.cmpi eq, %arg1, %c0_i32 : i32
    %1 = arith.extui %0 : i1 to i32
    %c0_i32_0 = arith.constant 0 : i32
    %2 = arith.cmpi ne, %1, %c0_i32_0 : i32
    scf.if %2 {
      %c0_31 = arith.constant 0 : index
      %c0_32 = arith.constant 0 : index
      %56 = vector.load %arg2[%c0_31, %c0_32] : memref<8x32xf32, #tpu.memory_space<vmem>>, vector<8x32xf32>
      %c0_33 = arith.constant 0 : index
      %c0_34 = arith.constant 0 : index
      %57 = vector.load %arg11[%c0_33, %c0_34] : memref<8x32xf32, #tpu.memory_space<vmem>>, vector<8x32xf32>
      tpu.vector_store %arg11[%c0_33, %c0_34], %56 {strides = array<i32>} : memref<8x32xf32, #tpu.memory_space<vmem>>, vector<8x32xf32>,
    } else {
    }
    %c0 = arith.constant 0 : index
    %c0_1 = arith.constant 0 : index
    %3 = vector.load %arg11[%c0, %c0_1] : memref<8x32xf32, #tpu.memory_space<vmem>>, vector<8x32xf32>
    %c0_2 = arith.constant 0 : index
    %c0_3 = arith.constant 0 : index
    %c0_4 = arith.constant 0 : index
    %4 = vector.load %arg4[%c0_2, %c0_3, %c0_4] : memref<1x8x32xf32, #tpu.memory_space<vmem>>, vector<1x8x32xf32>
    %5 = vector.shape_cast %4 : vector<1x8x32xf32> to vector<8x32xf32>
    %c0_5 = arith.constant 0 : index
    %c0_6 = arith.constant 0 : index
    %c0_7 = arith.constant 0 : index
    %6 = vector.load %arg5[%c0_5, %c0_6, %c0_7] : memref<1x32x128xf32, #tpu.memory_space<vmem>>, vector<1x32x128xf32>
    %7 = vector.shape_cast %6 : vector<1x32x128xf32> to vector<32x128xf32>
    %cst = arith.constant dense<0.000000e+00> : vector<8x128xf32>
    %8 = tpu.matmul %3, %7, %cst {dimension_numbers = #tpu.dot_dimension_numbers<[1], [0], [0], [1], [0, 0, 1, 1], [], []>} : vector<8x32xf32>, vector<32x128xf32>, vector<8x128xf32> -> vector<8x128xf32>
    %c0_8 = arith.constant 0 : index
    %c0_9 = arith.constant 0 : index
    %c0_10 = arith.constant 0 : index
    %9 = vector.load %arg3[%c0_8, %c0_9, %c0_10] : memref<1x8x32xf32, #tpu.memory_space<vmem>>, vector<1x8x32xf32>
    %10 = vector.shape_cast %9 : vector<1x8x32xf32> to vector<8x32xf32>
    %c0_11 = arith.constant 0 : index
    %c0_12 = arith.constant 0 : index
    %c0_13 = arith.constant 0 : index
    %11 = vector.load %arg6[%c0_11, %c0_12, %c0_13] : memref<1x32x128xf32, #tpu.memory_space<vmem>>, vector<1x32x128xf32>
    %12 = vector.shape_cast %11 : vector<1x32x128xf32> to vector<32x128xf32>
    %cst_14 = arith.constant dense<0.000000e+00> : vector<8x128xf32>
    %13 = tpu.matmul %10, %12, %cst_14 {dimension_numbers = #tpu.dot_dimension_numbers<[1], [0], [0], [1], [0, 0, 1, 1], [], []>} : vector<8x32xf32>, vector<32x128xf32>, vector<8x128xf32> -> vector<8x128xf32>
    %14 = arith.addf %8, %13 : vector<8x128xf32>
    %c0_15 = arith.constant 0 : index
    %c0_16 = arith.constant 0 : index
    %c0_17 = arith.constant 0 : index
    %15 = vector.load %arg7[%c0_15, %c0_16, %c0_17] : memref<1x1x128xf32, #tpu.memory_space<vmem>>, vector<1x1x128xf32>
    %16 = vector.shape_cast %15 : vector<1x1x128xf32> to vector<1x128xf32>
    %17 = vector.broadcast %16 : vector<1x128xf32> to vector<8x128xf32>
    %18 = arith.addf %14, %17 : vector<8x128xf32>
    %19 = tpu.iota {dimensions = array<i32: 1>} : vector<8x128xi32>
    %c64_i32 = arith.constant 64 : i32
    %20 = vector.broadcast %c64_i32 : i32 to vector<8x128xi32>
    %21 = arith.cmpi sge, %19, %20 : vector<8x128xi32>
    %c96_i32 = arith.constant 96 : i32
    %22 = vector.broadcast %c96_i32 : i32 to vector<8x128xi32>
    %23 = arith.cmpi slt, %19, %22 : vector<8x128xi32>
    %24 = arith.andi %21, %23 : vector<8x128xi1>
    %cst_18 = arith.constant 1.000000e+00 : f32
    %cst_19 = arith.constant 5.000000e-01 : f32
    %25 = vector.broadcast %cst_18 : f32 to vector<8x128xf32>
    %26 = vector.broadcast %cst_19 : f32 to vector<8x128xf32>
    %27 = arith.select %24, %25, %26 : vector<8x128xi1>, vector<8x128xf32>
    %cst_20 = arith.constant 0.000000e+00 : f32
    %cst_21 = arith.constant 5.000000e-01 : f32
    %28 = vector.broadcast %cst_20 : f32 to vector<8x128xf32>
    %29 = vector.broadcast %cst_21 : f32 to vector<8x128xf32>
    %30 = arith.select %24, %28, %29 : vector<8x128xi1>, vector<8x128xf32>
    %31 = arith.mulf %27, %18 : vector<8x128xf32>
    %32 = math.tanh %31 : vector<8x128xf32>
    %33 = arith.mulf %27, %32 : vector<8x128xf32>
    %34 = arith.addf %33, %30 : vector<8x128xf32>
    %35 = vector.extract_strided_slice %34 {offsets = [0, 0], sizes = [8, 32], strides = [1, 1]} : vector<8x128xf32> to vector<8x32xf32>
    %36 = vector.extract_strided_slice %34 {offsets = [0, 32], sizes = [8, 32], strides = [1, 1]} : vector<8x128xf32> to vector<8x32xf32>
    %37 = vector.extract_strided_slice %34 {offsets = [0, 64], sizes = [8, 32], strides = [1, 1]} : vector<8x128xf32> to vector<8x32xf32>
    %38 = vector.extract_strided_slice %34 {offsets = [0, 96], sizes = [8, 32], strides = [1, 1]} : vector<8x128xf32> to vector<8x32xf32>
    %39 = arith.mulf %36, %5 : vector<8x32xf32>
    %40 = arith.mulf %35, %37 : vector<8x32xf32>
    %41 = arith.addf %39, %40 : vector<8x32xf32>
    %42 = math.tanh %41 : vector<8x32xf32>
    %43 = arith.mulf %38, %42 : vector<8x32xf32>
    %c0_22 = arith.constant 0 : index
    %c0_23 = arith.constant 0 : index
    %c0_24 = arith.constant 0 : index
    %44 = vector.load %arg9[%c0_22, %c0_23, %c0_24] : memref<1x8x32xf32, #tpu.memory_space<vmem>>, vector<1x8x32xf32>
    %45 = vector.shape_cast %44 : vector<1x8x32xf32> to vector<8x32xf32>
    %46 = vector.shape_cast %43 : vector<8x32xf32> to vector<1x8x32xf32>
    tpu.vector_store %arg9[%c0_22, %c0_23, %c0_24], %46 {strides = array<i32>} : memref<1x8x32xf32, #tpu.memory_space<vmem>>, vector<1x8x32xf32>,
    %c0_25 = arith.constant 0 : index
    %c0_26 = arith.constant 0 : index
    %c0_27 = arith.constant 0 : index
    %47 = vector.load %arg10[%c0_25, %c0_26, %c0_27] : memref<1x8x32xf32, #tpu.memory_space<vmem>>, vector<1x8x32xf32>
    %48 = vector.shape_cast %47 : vector<1x8x32xf32> to vector<8x32xf32>
    %49 = vector.shape_cast %41 : vector<8x32xf32> to vector<1x8x32xf32>
    tpu.vector_store %arg10[%c0_25, %c0_26, %c0_27], %49 {strides = array<i32>} : memref<1x8x32xf32, #tpu.memory_space<vmem>>, vector<1x8x32xf32>,
    %50 = arith.addf %43, %3 : vector<8x32xf32>
    %c0_28 = arith.constant 0 : index
    %c0_29 = arith.constant 0 : index
    %51 = vector.load %arg8[%c0_28, %c0_29] : memref<8x32xf32, #tpu.memory_space<vmem>>, vector<8x32xf32>
    tpu.vector_store %arg8[%c0_28, %c0_29], %50 {strides = array<i32>} : memref<8x32xf32, #tpu.memory_space<vmem>>, vector<8x32xf32>,
    %c1_i32 = arith.constant 1 : i32
    %52 = arith.addi %arg1, %c1_i32 : i32
    %c3_i32 = arith.constant 3 : i32
    %53 = arith.cmpi slt, %52, %c3_i32 : i32
    %54 = arith.extui %53 : i1 to i32
    %c0_i32_30 = arith.constant 0 : i32
    %55 = arith.cmpi ne, %54, %c0_i32_30 : i32
    scf.if %55 {
      %c0_31 = arith.constant 0 : index
      %c0_32 = arith.constant 0 : index
      %56 = vector.load %arg11[%c0_31, %c0_32] : memref<8x32xf32, #tpu.memory_space<vmem>>, vector<8x32xf32>
      tpu.vector_store %arg11[%c0_31, %c0_32], %50 {strides = array<i32>} : memref<8x32xf32, #tpu.memory_space<vmem>>, vector<8x32xf32>,
    } else {
    }
    return
  }
  func.func @transform_0(%arg0: i32, %arg1: i32) -> (i32, i32) {
    %c0_i32 = arith.constant 0 : i32
    %c0_i32_0 = arith.constant 0 : i32
    return %arg0, %c0_i32 : i32, i32
  }
  func.func @transform_1(%arg0: i32, %arg1: i32) -> (i32, i32, i32) {
    %c0_i32 = arith.constant 0 : i32
    %c0_i32_0 = arith.constant 0 : i32
    return %arg1, %arg0, %c0_i32 : i32, i32, i32
  }
  func.func @transform_2(%arg0: i32, %arg1: i32) -> (i32, i32, i32) {
    %c0_i32 = arith.constant 0 : i32
    %c0_i32_0 = arith.constant 0 : i32
    return %arg1, %arg0, %c0_i32 : i32, i32, i32
  }
  func.func @transform_3(%arg0: i32, %arg1: i32) -> (i32, i32, i32) {
    %c0_i32 = arith.constant 0 : i32
    %c0_i32_0 = arith.constant 0 : i32
    %c0_i32_1 = arith.constant 0 : i32
    return %arg1, %c0_i32, %c0_i32_0 : i32, i32, i32
  }
  func.func @transform_4(%arg0: i32, %arg1: i32) -> (i32, i32, i32) {
    %c0_i32 = arith.constant 0 : i32
    %c0_i32_0 = arith.constant 0 : i32
    %c0_i32_1 = arith.constant 0 : i32
    return %arg1, %c0_i32, %c0_i32_0 : i32, i32, i32
  }
  func.func @transform_5(%arg0: i32, %arg1: i32) -> (i32, i32, i32) {
    %c0_i32 = arith.constant 0 : i32
    %c0_i32_0 = arith.constant 0 : i32
    %c0_i32_1 = arith.constant 0 : i32
    return %arg1, %c0_i32, %c0_i32_0 : i32, i32, i32
  }
  func.func @transform_6(%arg0: i32, %arg1: i32) -> (i32, i32) {
    %c0_i32 = arith.constant 0 : i32
    %c0_i32_0 = arith.constant 0 : i32
    return %arg0, %c0_i32 : i32, i32
  }
  func.func @transform_7(%arg0: i32, %arg1: i32) -> (i32, i32, i32) {
    %c0_i32 = arith.constant 0 : i32
    %c0_i32_0 = arith.constant 0 : i32
    return %arg1, %arg0, %c0_i32 : i32, i32, i32
  }
  func.func @transform_8(%arg0: i32, %arg1: i32) -> (i32, i32, i32) {
    %c0_i32 = arith.constant 0 : i32
    %c0_i32_0 = arith.constant 0 : i32
    return %arg1, %arg0, %c0_i32 : i32, i32, i32
  }
}

</mosaic_0001>

<bundles_post_ra>
// kernel: stack_lstm_cell_forward.1
= control target key start
LH: loop header
LB: loop body
LE: loop exit
PB: predicated region body
PF: predicated region fallthrough
CT: control target
= control target key end

     0   :  { %s1598_s0 = inlined_call_operand.vmem [shape: f32[8,32], index: 0, kind: input, shape index: {}]   ;;  %s1599_s1 = inlined_call_operand.hbm [shape: f32[3,8,32], index: 1, kind: input, shape index: {}, may-alias: {1,7}]   ;;  %s1600_s2 = inlined_call_operand.hbm [shape: f32[3,8,32], index: 2, kind: input, shape index: {}, may-alias: {2,8}]   ;;  %s1601_s3 = inlined_call_operand.hbm [shape: f32[3,32,128], index: 3, kind: input, shape index: {}]   ;;  %s1602_s4 = inlined_call_operand.hbm [shape: f32[3,32,128], index: 4, kind: input, shape index: {}]   ;;  %s1603_s5 = inlined_call_operand.vmem [shape: f32[3,1,128], index: 5, kind: input, shape index: {}]   ;;  %s1604_s6 = inlined_call_operand.hbm [shape: f32[8,32], index: 6, kind: output, shape index: {0}]   ;;  %s1605_s7 = inlined_call_operand.hbm [shape: f32[3,8,32], index: 7, kind: output, shape index: {1}, may-alias: {1,7}]   ;;  %s1606_s8 = inlined_call_operand.hbm [shape: f32[3,8,32], index: 8, kind: output, shape index: {2}, may-alias: {2,8}]  }
   0x1   :  { %1616 = sst [smem:[#allocation26_spill]] %s1600_s2 }
   0x2   :  { %1617 = sst [smem:[#allocation27_spill]] %s1604_s6 }
   0x3   :  { %1618 = sst [smem:[#allocation28_spill]] %s1605_s7 }
   0x4   :  { %1619 = sst [smem:[#allocation29_spill]] %s1606_s8 }
   0x5   :  { %14 = vsyncpa [#allocation4], 0 }
   0x6   :  { %16 = vsyncpa [#allocation4 + $0x1], 0 }
   0x7   :  { %17 = vsyncpa [#allocation7], 0 }
   0x8   :  { %19 = vsyncpa [#allocation7 + $0x1], 0 }
   0x9   :  { %20 = vsyncpa [#allocation10], 0 }
   0xa   :  { %22 = vsyncpa [#allocation10 + $0x1], 0 }
   0xb   :  { %23 = vsyncpa [#allocation5], 0 }
   0xc   :  { %24 = vsyncpa [#allocation13], 0 }
   0xd   :  { %26 = vsyncpa [#allocation13 + $0x1], 0  ;;  %s1363_s27 = smov 0   ;;  %s1365_s28 = smov 0  }
   0xe   :  { %s1367_s29 = smov 0   ;;  %s1369_s30 = smov 0  }
   0xf   :  { %s1371_s9 = smov 0   ;;  %s1373_s10 = smov 0  }
  0x10 LB: > { %1620 = sst [smem:[#allocation20_spill]] %s1297_s29  ;;  %s1392_s11 = sadd.s32 4294967295, %s1309_s10   ;;  %s1309_s10 = sphi %s1373_s10, %s32_s10   ;;  %s1305_s9 = sphi %s1371_s9, %s1642_s9   ;;  %s1301_s30 = sphi %s1369_s30, %s1641_s30   ;;  %s1297_s29 = sphi %s1367_s29, %s1640_s29   ;;  %s1293_s28 = sphi %s1365_s28, %s1644_s28   ;;  %s1289_s27 = sphi %s1363_s27, %s1643_s27  }
  0x11   : > { %1621 = sst [smem:[#allocation21_spill]] %s1305_s9  ;;  %s1607_s12 = sadd.s32 4294967294, %s1309_s10  }
  0x12   : > { %1622 = sst [smem:[#allocation22_spill]] %s1309_s10  ;;  %s41_s13 = sadd.s32 1, %s1305_s9 }
  0x13   : > { %s79_s14 = sadd.s32 1, %s1297_s29  ;;  %p42_p0 = scmp.ge.s32.totalorder %s41_s13, 3 }
  0x14   : > { %p86_p1 = scmp.ne.s32.totalorder %s1297_s29, %s1293_s28  ;;  %p87_p2 = scmp.eq.s32.totalorder %s1309_s10, 0 }
  0x15   : > { %p92_p3 = scmp.ne.s32.totalorder %s1293_s28, %s1289_s27  ;;  %s1646_s13 = smov (%p42_p0, %s41_s13), 0 }
  0x16   : > { %1623 = sst [smem:[#allocation23_spill]] %s1646_s13  ;;  %p1403_p4 = por %p87_p2, %p86_p1 }
  0x17   : > { %p93_p5 = scmp.eq.s32.totalorder %s1392_s11, 0  ;;  %s74_s16 = ssub.s32 %s1305_s9, %s1646_s13 }
  0x18   : > { %p250_p6 = scmp.eq.s32.totalorder %s1392_s11, 2  ;;  %p77_p7 = scmp.eq.s32.totalorder %s74_s16, 0 }
  0x19   : > { %p1411_p8 = por %p93_p5, %p92_p3  ;;  %p256_p10 = scmp.eq.s32.totalorder %s1607_s12, 2 }
  0x1a   : > { %p1417_p9 = por %p250_p6, %p86_p1  ;;  %p975_p12 = scmp.lt.s32.totalorder %s1309_s10, 3 }
  0x1b   : > { %s1424_s19 = scalar_select %p77_p7, %s1297_s29, %s79_s14  }
  0x1c   : > { %p1426_p11 = por %p256_p10, %p92_p3  ;;  %s1432_s21 = sand.u32 1, %s1297_s29  }
  0x1d   : > { %1627 = sst [smem:[#allocation24_spill]] %s1424_s19  ;;  %s908_s22 = sshll.u32 %s1432_s21, 3 }
  0x1e   : > { %s1628_s20 = scalar_select %p1426_p11, 1, 0 }
  0x1f   : > { %s909_s23 = sshll.u32 %s1305_s9, 3  ;;  %p1438_p13 = pnand %p975_p12, %p1403_p4 }
  0x20   : > { %1629 = sst [smem:[#allocation25_spill]] %s1628_s20  ;;  %s331_s25 = sand.u32 1, %s1309_s10  }
  0x21   : > { %s1631_s2 = sld [smem:[#allocation26_spill]]  ;;  %s335_s12 = scalar_lea.vmem [#allocation6], %s908_s22 }
  0x22   : > { %s344_s13 = sshll.u32 %s335_s12, 4  ;;  %s332_s19 = scalar_lea.sflag [#allocation7], %s331_s25  ;;  %s345_s13 = int_to_ptr.vmem [resolvable:$true] %s344_s13 }
  0x23   : > { %s912_s15 = sshll.u32 %s1432_s21, 5  ;;  %s937_s29 = sshll.u32 %s1305_s9, 5 }
  0x24   : > { %p918_p0 = scmp.ge.s32.totalorder %s1309_s10, 1  ;;  %p399_p1 = scmp.lt.s32.totalorder %s1309_s10, 4 }
  0x25   : > { %s312_s25 = scalar_lea.sflag [#allocation4], %s1432_s21  ;;  %s360_s9 = scalar_lea.hbm %s1601_s3, %s937_s29 }
  0x26   : > { %p1452_p2 = pnand %p918_p0, %p399_p1  ;;  %s361_s10 = sshll.u32 %s360_s9, 4  ;;  %s362_s10 = int_to_ptr.hbm [resolvable:$true] %s361_s10 }
  0x27   : > { %s340_s14 = scalar_lea.hbm %s1631_s2, %s909_s23  ;;  %s315_s2 = scalar_lea.vmem [#allocation3], %s908_s22 }
  0x28   : > { %s342_s16 = sshll.u32 %s340_s14, 4  ;;  %s320_s14 = scalar_lea.hbm %s1599_s1, %s909_s23  ;;  %s343_s16 = int_to_ptr.hbm [resolvable:$true] %s342_s16 }
  0x29   : > { %961 = dma.hbm_to_vmem [thread:$0]  (!%p1438_p13), %s343_s16, 128, %s345_s13, %s332_s19  }
  0x2a   : > { %s322_s12 = sshll.u32 %s320_s14, 4  ;;  %s324_s8 = sshll.u32 %s315_s2, 4  ;;  %s323_s12 = int_to_ptr.hbm [resolvable:$true] %s322_s12  ;;  %s325_s8 = int_to_ptr.vmem [resolvable:$true] %s324_s8 }
  0x2b   : > { %958 = dma.hbm_to_vmem [thread:$0]  (!%p1438_p13), %s323_s12, 128, %s325_s8, %s312_s25  }
  0x2c   : > { %s355_s6 = scalar_lea.vmem [#allocation8], %s912_s15  ;;  %s1311_s23 = smov 128  }
  0x2d   : > { %s363_s7 = sshll.u32 %s355_s6, 4  ;;  %s1312_s26 = smov 8   ;;  %s364_s7 = int_to_ptr.vmem [resolvable:$true] %s363_s7 }
  0x2e   : > { %964 = dma.hbm_to_vmem [thread:$0]  (!%p1438_p13), %s362_s10, 512, %s364_s7, %s332_s19, %s1311_s23, %s1311_s23, %s1312_s26  }
  0x2f   : > { %s382_s27 = scalar_lea.hbm %s1602_s4, %s937_s29  ;;  %s377_s8 = scalar_lea.vmem [#allocation9], %s912_s15 }
  0x30   : > { %s385_s14 = sshll.u32 %s377_s8, 4  ;;  %s383_s12 = sshll.u32 %s382_s27, 4  ;;  %s386_s14 = int_to_ptr.vmem [resolvable:$true] %s385_s14  ;;  %s384_s12 = int_to_ptr.hbm [resolvable:$true] %s383_s12 }
  0x31   : > { %s374_s25 = scalar_lea.sflag [#allocation10], %s1432_s21  ;;  %403 = sbr.rel (%p1452_p2) target bundleno = 744 (0x2e8), region = 44 }
  0x32   : > { %967 = dma.hbm_to_vmem [thread:$0]  (!%p1438_p13), %s384_s12, 512, %s386_s14, %s374_s25, %s1311_s23, %s1311_s23, %s1312_s26  }
  0x33   : > { %s405_s6 = sand.u32 (!%p1452_p2), 1, %s1293_s28  }
  0x34   : > { %s1476_s9 = sshll.u32 (!%p1452_p2), %s405_s6, 3  ;;  %s406_s7 = scalar_lea.sflag (!%p1452_p2), [#allocation4], %s405_s6 }
  0x35   : > { %s409_s10 = scalar_lea.vmem (!%p1452_p2), [#allocation3], %s1476_s9 }
  0x36   : > { %1268 = dma.done.wait (%p1411_p8), %s406_s7, 128  }
  0x37   : > { %1270 = vsyncadd (%p1411_p8), %s406_s7, 4294967168  ;;  %s415_s29 = sand.u32 1, %s1392_s11   ;;  %s419_s20 = scalar_lea.vmem [#allocation6], %s1476_s9 }
  0x38   : > { %s416_s19 = scalar_lea.sflag [#allocation7], %s415_s29 }
  0x39   : > { %1272 = dma.done.wait (%p1411_p8), %s416_s19, 640  }
  0x3a   : > { %1274 = vsyncadd (%p1411_p8), %s416_s19, 4294966656  ;;  %s921_s21 = sshll.u32 %s405_s6, 5  ;;  %s436_s15 = scalar_lea.sflag [#allocation10], %s405_s6 }
  0x3b   : > { %s429_s24 = scalar_lea.vmem [#allocation8], %s921_s21  ;;  %s439_s13 = scalar_lea.vmem [#allocation9], %s921_s21 }
  0x3c   : > { %1276 = dma.done.wait (%p1411_p8), %s436_s15, 512  }
  0x3d   : > { %1278 = vsyncadd (%p1411_p8), %s436_s15, 4294966784  ;;  %p504_p3 = scmp.lt.s32.totalorder %s1301_s30, 2  ;;  %s492_s22 = scalar_lea.vmem [#allocation12], %s1476_s9 }
  0x3e   : > { %s499_s27 = scalar_lea.vmem [#allocation14], %s1476_s9  ;;  %p925_p4 = scmp.ne.s32.totalorder %s1301_s30, 0 }
  0x3f   : > { %s1497_s16 = scalar_select %p504_p3, %s1301_s30, 2 }
  0x40   : > { %510 = sbr.rel (%p925_p4) target bundleno = 71 (0x47), region = 64 }
  0x41   : > { %s506_s2 = scalar_lea.vmem %s1603_s5, %s1497_s16 }
  0x45   : > { %v511_v0 = vld [vmem:[%s1598_s0] sm:$0xff]  ;;  %vm512_vm0 = vcmask 261120  }
  0x46   : > { %513 = vst.msk [vmem:[#allocation2] sm:$0xff] %vm512_vm0, %v511_v0 }
  0x47 PF: > { %v524_v1 = vld [vmem:[%s439_s13 + $0x18] sm:$0xff]  ;;  %v523_v3 = vld [vmem:[%s439_s13 + $0x10] sm:$0xff]  ;;  %v522_v5 = vld [vmem:[%s439_s13 + $0x8] sm:$0xff]  ;;  %vm525_vm1 = vcmask 261120   ;;  %v577_v11 = vlaneseq  ;;  %v1313_v17 = vmov 0.5   ;;  %s1314_s25 = smov 64  }
  0x48   : > { %v519_v2 = vld [vmem:[%s429_s24 + $0x18] sm:$0xff]  ;;  %541 = vmatpush.msra.mxu0 %v524_v1  ;;  %v518_v4 = vld [vmem:[%s429_s24 + $0x10] sm:$0xff]  ;;  %v517_v6 = vld [vmem:[%s429_s24 + $0x8] sm:$0xff]  ;;  %s1315_s6 = smov 32   ;;  %s1316_s7 = smov 96  }
  0x49   : > { %564 = vmatpush.msra.mxu1 %v519_v2  ;;  %v521_v7 = vld [vmem:[%s439_s13] sm:$0xff]  ;;  %v578_v12 = vand.u32 127, %v577_v11  ;;  %v1034_v13 = vld [vmem:[%s506_s2] ss:$0 sm:$0xff] }
  0x4a   : > { %542 = vmatpush.msra.mxu0 %v523_v3  ;;  %v516_v8 = vld [vmem:[%s429_s24] sm:$0xff]  ;;  %v515_v25 = vld [vmem:[%s419_s20] sm:$0xff] }
  0x4b   : > { %565 = vmatpush.msra.mxu1 %v518_v4  ;;  %v520_v9 = vld [vmem:[%s409_s10] sm:$0xff]  ;;  %vm579_vm2 = vcmp.ge.s32.totalorder %v578_v12, 64  ;;  %vm580_vm3 = vcmp.lt.s32.totalorder %v578_v12, 96  ;;  %s628_s10 = sadd.s32 1, %s1301_s30 }
  0x4c   : > { %543 = vmatpush.msra.mxu0 %v522_v5  ;;  %vm581_vm4 = vmand %vm579_vm2, %vm580_vm3  ;;  %p928_p5 = scmp.ge.s32.totalorder %s628_s10, 3 }
  0x4d   : > { %566 = vmatpush.msra.mxu1 %v517_v6  ;;  %v514_v10 = vld [vmem:[#allocation2] sm:$0xff]  ;;  %v582_v18 = vsel %vm581_vm4, 1.0, %v1313_v17  ;;  %v583_v22 = vsel %vm581_vm4, 0.0, %v1313_v17 }
  0x4e   : > { %544 = vmatpush.msra.mxu0 %v521_v7  ;;  %619 = vrot.lane.b32.xlu2 %v514_v10, %s1316_s7 }
  0x4f   : > { %567 = vmatpush.msra.mxu1 %v516_v8  ;;  %926 = vmatmul.msk.f32.vlgmr.msra.gmra.mxu0 %vm525_vm1, %v520_v9 }
  0x50   : > { %927 = vmatmul.msk.f32.vlgmr.msra.gmra.mxu1 %vm525_vm1, %v514_v10 }
  0xa8   : > { %v620_v35 = vpop.permute.xlu2 %619 }
  0xcc   : > { %v546_v14 = vpop.f32.mrf.mxu0 }
  0xcd   : > { %v569_v15 = vpop.f32.mrf.mxu1 }
  0xce   : > { %v570_v16 = vadd.f32 %v569_v15, %v546_v14 }
  0xd0   : > { %v576_v19 = vadd.f32 %v1034_v13, %v570_v16 }
  0xd2   : > { %v584_v20 = vmul.f32 %v582_v18, %v576_v19 }
  0xd4   : > { %1035 = vtanh.f32 %v584_v20 }
  0xda   : > { %v1036_v21 = vpop.eup %1035 }
  0xdb   : > { %v586_v23 = vmul.f32 %v1036_v21, %v582_v18 }
  0xdd   : > { %v587_v24 = vadd.f32 %v586_v23, %v583_v22 }
  0xdf   : > { %594 = vrot.lane.b32.xlu0 %v587_v24, %s1314_s25 }
  0xe7   : > { %589 = vrot.lane.b32.xlu0 %v515_v25, %s1315_s6 }
 0x151   : > { %v595_v26 = vpop.permute.xlu0 %594 }
 0x152   : > { %v597_v27 = vmul.f32 %v595_v26, %v587_v24 }
 0x154   : > { %599 = vrot.lane.b32.xlu1 %v597_v27, %s1315_s6 }
 0x159   : > { %v590_v28 = vpop.permute.xlu0 %589 }
 0x15a   : > { %v592_v29 = vmul.f32 %v590_v28, %v587_v24 }
 0x1c6   : > { %v600_v30 = vpop.permute.xlu1 %599 }
 0x1c7   : > { %v602_v31 = vadd.f32 %v600_v30, %v592_v29 }
 0x1c9   : > { %1037 = vtanh.f32 %v602_v31  ;;  %615 = vrot.lane.b32.xlu0 %v602_v31, %s1316_s7 }
 0x1cf   : > { %v1038_v32 = vpop.eup %1037 }
 0x1d0   : > { %605 = vrot.lane.b32.xlu1 %v1038_v32, %s1314_s25 }
 0x23b   : > { %v616_v33 = vpop.permute.xlu0 %615 }
 0x23c   : > { %618 = vst.msk [vmem:[%s499_s27] sm:$0xff] %vm525_vm1, %v616_v33 }
 0x242   : > { %v606_v34 = vpop.permute.xlu1 %605 }
 0x243   : > { %v608_v36 = vmul.f32 %v606_v34, %v587_v24 }
 0x245   : > { %v622_v37 = vadd.f32 %v620_v35, %v608_v36  ;;  %610 = vrot.lane.b32.xlu2 %v608_v36, %s1315_s6 }
 0x247   : > { %624 = vrot.lane.b32.xlu1 %v622_v37, %s1315_s6 }
 0x29f   : > { %v611_v38 = vpop.permute.xlu2 %610 }
 0x2a0   : > { %613 = vst.msk [vmem:[%s492_s22] sm:$0xff] %vm525_vm1, %v611_v38 }
 0x2b6   : > { %632 = sbr.rel (%p928_p5) target bundleno = 700 (0x2bc), region = 68 }
 0x2b9   : > { %v625_v39 = vpop.permute.xlu1 %624 }
 0x2ba   : > { %627 = vst.msk [vmem:[#allocation11] sm:$0xff] %vm525_vm1, %v625_v39 }
 0x2bb   : > { %633 = vst.msk [vmem:[#allocation2] sm:$0xff] %vm525_vm1, %v625_v39 }
 0x2bc PF: > { %s932_s19 = sshll.u32 %s1301_s30, 3  ;;  %s1633_s24 = sld [smem:[#allocation28_spill]] }
 0x2bd   : > { %s667_s13 = sshll.u32 %s492_s22, 4  ;;  %s1537_s23 = scalar_lea.sflag [#allocation13], %s415_s29  ;;  %s668_s13 = int_to_ptr.vmem [resolvable:$true] %s667_s13 }
 0x2c2   : > { %s665_s15 = scalar_lea.hbm %s1633_s24, %s932_s19  ;;  %s1179_s17 = scalar_lea.hbm %s1633_s24, 24 }
 0x2c3   : > { %s669_s16 = sshll.u32 %s665_s15, 4  ;;  %s670_s16 = int_to_ptr.hbm [resolvable:$true] %s669_s16 }
 0x2c4   : > { %s1173_s26 = sshra.s32 %s670_s16, 4  ;;  %s1174_s26 = int_to_ptr.hbm [resolvable:$true] %s1173_s26 }
 0x2c5   : > { %s1175_s2 = scalar_lea.hbm %s1174_s26, 8  ;;  %p1180_p12 = scmp.lt.s32.totalorder %s1174_s26, %s1633_s24 }
 0x2c6   : > { %p1176_p7 = scmp.ne.s32.totalorder %s1174_s26, %s1175_s2  ;;  %p1181_p13 = scmp.lt.s32.totalorder %s1179_s17, %s1175_s2 }
 0x2c8   : > { %p1177_p8 = pnand %p1176_p7, %p1417_p9  ;;  %p1182_p0 = por %p1181_p13, %p1180_p12 }
 0x2ca   : > { %p1178_p10 = pneg %p1177_p8 }
 0x2cc   : > { %p1183_p1 = pnand %p1182_p0, %p1178_p10 }
 0x2ce   : > { %1186 = shalt.err (!%p1183_p1)
}
 0x2cf   : > { %949 = dma.vmem_to_hbm [thread:$0]  (%p1417_p9), %s668_s13, 128, %s670_s16, %s1537_s23  }
 0x2d0   : > { %s1634_s25 = sld [smem:[#allocation27_spill]]  ;;  %s1317_s7 = smov [#allocation11]  }
 0x2d1   : > { %s652_s10 = sshll.u32 %s1317_s7, 4  ;;  %s1635_s15 = sld [smem:[#allocation29_spill]]  ;;  %s653_s10 = int_to_ptr.vmem [resolvable:$true] %s652_s10 }
 0x2d2   : > { %s682_s2 = sshll.u32 %s499_s27, 4  ;;  %s683_s2 = int_to_ptr.vmem [resolvable:$true] %s682_s2 }
 0x2d6   : > { %s654_s6 = sshll.u32 %s1634_s25, 4  ;;  %s655_s6 = int_to_ptr.hbm [resolvable:$true] %s654_s6 }
 0x2d7   : > { %s680_s26 = scalar_lea.hbm %s1635_s15, %s932_s19  ;;  %s1235_s14 = scalar_lea.hbm %s1635_s15, 24 }
 0x2d8   : > { %948 = dma.vmem_to_hbm [thread:$0]  (%p250_p6), %s653_s10, 128, %s655_s6, [#allocation5]  }
 0x2d9   : > { %s684_s30 = sshll.u32 %s680_s26, 4  ;;  %s685_s30 = int_to_ptr.hbm [resolvable:$true] %s684_s30 }
 0x2da   : > { %s1229_s13 = sshra.s32 %s685_s30, 4  ;;  %s1230_s13 = int_to_ptr.hbm [resolvable:$true] %s1229_s13 }
 0x2db   : > { %s1231_s16 = scalar_lea.hbm %s1230_s13, 8  ;;  %p1236_p5 = scmp.lt.s32.totalorder %s1230_s13, %s1635_s15 }
 0x2dc   : > { %p1232_p2 = scmp.ne.s32.totalorder %s1230_s13, %s1231_s16  ;;  %p1237_p7 = scmp.lt.s32.totalorder %s1235_s14, %s1231_s16 }
 0x2de   : > { %p1233_p3 = pnand %p1232_p2, %p1417_p9  ;;  %p1238_p8 = por %p1237_p7, %p1236_p5 }
 0x2e0   : > { %p1234_p4 = pneg %p1233_p3 }
 0x2e2   : > { %p1239_p10 = pnand %p1238_p8, %p1234_p4 }
 0x2e4   : > { %1242 = shalt.err (!%p1239_p10)
}
 0x2e5   : > { %950 = dma.vmem_to_hbm [thread:$0]  (%p1417_p9), %s683_s2, 128, %s685_s30, %s1537_s23  }
 0x2e6   : > { %1280 = dma.done.wait (%p250_p6), [#allocation5], 128  }
 0x2e7   : > { %1282 = vsyncadd (%p250_p6), [#allocation5], 4294967168 }
 0x2e8 PF: > { %s1636_s9 = sld [smem:[#allocation22_spill]] }
 0x2ee   : > { %p978_p12 = scmp.ge.s32.totalorder %s1636_s9, 2  ;;  %s1638_s29 = sadd.s32 4294967294, %s1636_s9  }
 0x2ef   : > { %s701_s22 = sand.u32 1, %s1638_s29  }
 0x2f0   : > { %p969_p13 = pnand %p978_p12, %p1426_p11  ;;  %s702_s25 = scalar_lea.sflag [#allocation13], %s701_s22 }
 0x2f2   : > { %p970_p0 = pneg %p969_p13 }
 0x2f4   : > { %1284 = dma.done.wait (%p970_p0), %s702_s25, 256  }
 0x2f5   : > { %1286 = vsyncadd (%p970_p0), %s702_s25, 4294967040  ;;  %s32_s10 = sadd.s32 1, %s1636_s9   ;;  %s1639_s18 = sld [smem:[#allocation20_spill]] }
 0x2f6   : > { %p29_p9 = scmp.ge.s32.totalorder %s32_s10, 5   ;;  %s1640_s29 = sld [smem:[#allocation24_spill]] }
 0x2f7   : > { %s1641_s30 = sld [smem:[#allocation21_spill]]  ;;  %s1643_s27 = smov %s1293_s28 }
 0x2f8   : > { %s1642_s9 = sld [smem:[#allocation23_spill]]  ;;  %31 = sbr.rel (!%p29_p9) target bundleno = 16 (0x10), region = 165 }
 0x2fb   : > { %s1644_s28 = smov %s1639_s18 }
 0x2fd   :  { %718 = vsyncpa [#allocation4], 1 }
 0x2fe   :  { %720 = vsyncpa [#allocation4 + $0x1], 1 }
 0x2ff   :  { %721 = vsyncpa [#allocation7], 1 }
 0x300   :  { %723 = vsyncpa [#allocation7 + $0x1], 1 }
 0x301   :  { %724 = vsyncpa [#allocation10], 1 }
 0x302   :  { %726 = vsyncpa [#allocation10 + $0x1], 1 }
 0x303   :  { %727 = vsyncpa [#allocation5], 1 }
 0x304   :  { %729 = vsyncpa [#allocation5 + $0x1], 1 }
 0x305   :  { %730 = vsyncpa [#allocation13], 1 }
 0x306   :  { %732 = vsyncpa [#allocation13 + $0x1], 1 }

</bundles_post_ra>
